<compile_context>
chip_gen: v5e
topology: v5e:2x2
jax: 0.10.0
libtpu: 0.0.40
codegen_flags: <defaults>
</compile_context>

<pallas_src>
import math

import jax
import jax.numpy as jnp
from jax.experimental import pallas as pl
from jax.experimental.pallas import tpu as pltpu

_SHIFT = math.log2(2.0)  # == 1.0, exactly as the PyTorch module does

# ~4 MiB of HBM bytes per buffer per grid step: per-step fixed overhead (~0.35 us)
# stays ~10% of stream time even at v7x's ~3.2 TB/s HBM.
_TILE_BYTES = 4 * 1024 * 1024
# Double-buffered in+out tiles (~16 MiB) + f32 elementwise temporaries (~1-2x
# tile) fit comfortably; > v5e's 16 MiB scoped default, < v7x's 64 MiB physical.
_VMEM_LIMIT_BYTES = 48 * 1024 * 1024


def _shifted_softplus_kernel(x_ref, o_ref):
    # Compute in f32 regardless of input dtype (no bf16 EUP path on v5e and
    # better accuracy near x ~= 0); the kernel stays memory-bound anyway.
    x = x_ref[...].astype(jnp.float32)
    # Overflow-safe softplus without a clamp/select branch:
    #   softplus(x) = max(x, 0) + log1p(exp(-|x|))
    sp = jnp.maximum(x, 0.0) + jnp.log1p(jnp.exp(-jnp.abs(x)))
    o_ref[...] = (sp - _SHIFT).astype(o_ref.dtype)


def shifted_softplus_old(x: jax.Array, *, donate: bool = False) -> jax.Array:
    """Elementwise shifted-softplus via a tiled Pallas TPU kernel (any shape).

    Set donate=True only if the caller donates `x` (enables in-place aliasing).
    """
    orig_shape, orig_dtype = x.shape, x.dtype
    n = int(math.prod(orig_shape))
    if n == 0:
        return x

    itemsize = jnp.dtype(orig_dtype).itemsize
    # Tile element count scaled so every dtype streams ~_TILE_BYTES per buffer.
    tile_elems = max(1024, _TILE_BYTES // itemsize)
    # Sublane packing for the input dtype: f32 -> 8, bf16 -> 16, int8/fp8 -> 32.
    pack = max(8, 32 // itemsize)

    aliases = {0: 0} if donate else {}
    cparams = pltpu.CompilerParams(
        dimension_semantics=("parallel",),      # shard grid steps across v7x's 2 TCs
        vmem_limit_bytes=_VMEM_LIMIT_BYTES,
    )

    if n % 128 == 0:
        # ---- lane-aligned sizes: lane-dense 2-D path, no pad / no slice ----
        lanes = 128
        for cand in (1024, 512, 256):
            if n % cand == 0:
                lanes = cand
                break
        rows = n // lanes
        x2d = x.reshape(rows, lanes)

        tile_rows = max(pack, (tile_elems // lanes) // pack * pack)
        if tile_rows >= rows:
            if rows >= 2 * pack:
                # Force >= 2 grid steps so "parallel" can use both TCs on v7x.
                tile_rows = pl.cdiv(pl.cdiv(rows, 2), pack) * pack
            else:
                tile_rows = rows  # single full-extent block (always legal)
        grid = (pl.cdiv(rows, tile_rows),)

        out2d = pl.pallas_call(
            _shifted_softplus_kernel,
            out_shape=jax.ShapeDtypeStruct((rows, lanes), orig_dtype),
            grid=grid,
            in_specs=[pl.BlockSpec((tile_rows, lanes), lambda i: (i, 0))],
            out_specs=pl.BlockSpec((tile_rows, lanes), lambda i: (i, 0)),
            compiler_params=cparams,
            input_output_aliases=aliases,
        )(x2d)
        return out2d.reshape(orig_shape)

    # ---- ragged sizes (n % 128 != 0): 1-D blocks, Pallas masks the partial
    # last block -> no jnp.pad and no output slice (no extra HBM copies) ----
    flat = x.reshape(n)
    if n <= 2048:
        tile_1d = n  # single full-extent block (legal for any n)
    else:
        # Multiple of 1024 (8 sublanes x 128 lanes); keep >= 2 grid steps.
        tile_1d = min(tile_elems // 1024 * 1024,
                      pl.cdiv(pl.cdiv(n, 2), 1024) * 1024)
    grid = (pl.cdiv(n, tile_1d),)

    out = pl.pallas_call(
        _shifted_softplus_kernel,
        out_shape=jax.ShapeDtypeStruct((n,), orig_dtype),
        grid=grid,
        in_specs=[pl.BlockSpec((tile_1d,), lambda i: (i,))],
        out_specs=pl.BlockSpec((tile_1d,), lambda i: (i,)),
        compiler_params=cparams,
        input_output_aliases=aliases,
    )(flat)
    return out.reshape(orig_shape)


if __name__ == "__main__":
    key = jax.random.PRNGKey(0)
    k1, k2, k3, k4 = jax.random.split(key, 4)

    def ref_fn(xx):
        # torch.nn.Softplus(beta=1, threshold=20)(x) - math.log2(2.0)
        xf = xx.astype(jnp.float32)
        sp = jnp.where(xf > 20.0, xf, jnp.log1p(jnp.exp(jnp.minimum(xf, 20.0))))
        return (sp - _SHIFT).astype(xx.dtype)

    # 1) NCHW-style f32 activation (lane-aligned single-block path).
    x1 = jax.random.normal(k1, (2, 4, 16, 16), dtype=jnp.float32) * 5.0
    o1 = jax.block_until_ready(shifted_softplus_old(x1))
    assert o1.shape == x1.shape and o1.dtype == x1.dtype
    assert jnp.allclose(o1, ref_fn(x1), atol=1e-6, rtol=1e-6)

    # 2) f32, lane-aligned, forced multi-block grid (megacore split path).
    x2 = jax.random.normal(k2, (16, 16, 128), dtype=jnp.float32) * 5.0
    o2 = jax.block_until_ready(shifted_softplus_old(x2))
    assert o2.shape == x2.shape and o2.dtype == x2.dtype
    assert jnp.allclose(o2, ref_fn(x2), atol=1e-6, rtol=1e-6)

    # 3) ragged size (5000 elements, not a multiple of 128): pad-free 1-D path
    #    with a masked partial last block.
    x3 = jax.random.normal(k3, (8, 625), dtype=jnp.float32) * 5.0
    o3 = jax.block_until_ready(shifted_softplus_old(x3))
    assert o3.shape == x3.shape and o3.dtype == x3.dtype
    assert jnp.allclose(o3, ref_fn(x3), atol=1e-6, rtol=1e-6)

    # 4) bf16 input: dtype-scaled tiles, 16-row sublane packing, f32 compute.
    x4 = (jax.random.normal(k4, (4, 64, 128), dtype=jnp.float32) * 5.0
          ).astype(jnp.bfloat16)
    o4 = jax.block_until_ready(shifted_softplus_old(x4))
    assert o4.shape == x4.shape and o4.dtype == x4.dtype
    assert jnp.allclose(o4.astype(jnp.float32), ref_fn(x4).astype(jnp.float32),
                        atol=0.02, rtol=0.02)

    print("KERNEL_OK")
</pallas_src>

<mosaic_0001>
module attributes {stable_mosaic.version = 11 : i64} {
  func.func @_shifted_softplus_kernel(%arg0: i32, %arg1: memref<2x1024xf32, #tpu.memory_space<vmem>>, %arg2: memref<2x1024xf32, #tpu.memory_space<vmem>>) attributes {dimension_semantics = [#tpu.dimension_semantics<parallel>], iteration_bounds = array<i64: 1>, scalar_prefetch = 0 : i64, scratch_operands = 0 : i64, tpu.core_type = #tpu.core_type<tc>, window_params = [{transform_indices = @transform_0, window_bounds = array<i64: 2, 1024>}, {transform_indices = @transform_1, window_bounds = array<i64: 2, 1024>}]} {
    %c0 = arith.constant 0 : index
    %c0_0 = arith.constant 0 : index
    %0 = vector.load %arg1[%c0, %c0_0] : memref<2x1024xf32, #tpu.memory_space<vmem>>, vector<2x1024xf32>
    %cst = arith.constant 0.000000e+00 : f32
    %1 = vector.broadcast %cst : f32 to vector<2x1024xf32>
    %2 = arith.maximumf %0, %1 : vector<2x1024xf32>
    %3 = math.absf %0 : vector<2x1024xf32>
    %cst_1 = arith.constant 0.000000e+00 : f32
    %4 = vector.broadcast %cst_1 : f32 to vector<2x1024xf32>
    %5 = arith.subf %4, %3 : vector<2x1024xf32>
    %6 = math.exp %5 : vector<2x1024xf32>
    %7 = math.log1p %6 : vector<2x1024xf32>
    %8 = arith.addf %2, %7 : vector<2x1024xf32>
    %cst_2 = arith.constant 1.000000e+00 : f32
    %9 = vector.broadcast %cst_2 : f32 to vector<2x1024xf32>
    %10 = arith.subf %8, %9 : vector<2x1024xf32>
    %c0_3 = arith.constant 0 : index
    %c0_4 = arith.constant 0 : index
    %11 = vector.load %arg2[%c0_3, %c0_4] : memref<2x1024xf32, #tpu.memory_space<vmem>>, vector<2x1024xf32>
    tpu.vector_store %arg2[%c0_3, %c0_4], %10 {strides = array<i32>} : memref<2x1024xf32, #tpu.memory_space<vmem>>, vector<2x1024xf32>,
    return
  }
  func.func @transform_0(%arg0: i32) -> (i32, i32) {
    %c0_i32 = arith.constant 0 : i32
    %c0_i32_0 = arith.constant 0 : i32
    return %arg0, %c0_i32 : i32, i32
  }
  func.func @transform_1(%arg0: i32) -> (i32, i32) {
    %c0_i32 = arith.constant 0 : i32
    %c0_i32_0 = arith.constant 0 : i32
    return %arg0, %c0_i32 : i32, i32
  }
}

</mosaic_0001>

<bundles_post_ra>
// kernel: tpu_custom_call.1
= control target key start
LH: loop header
LB: loop body
LE: loop exit
PB: predicated region body
PF: predicated region fallthrough
CT: control target
= control target key end

     0   :  { %6 = vsyncpa [#allocation3], 0  ;;  %s158_s0 = inlined_call_operand.hbm [shape: f32[2,1024], index: 0, kind: input, shape index: {}]   ;;  %s159_s1 = inlined_call_operand.hbm [shape: f32[2,1024], index: 1, kind: output, shape index: {}]  }
   0x1   :  { %7 = vsyncpa [#allocation4], 0  ;;  %s13_s8 = sshll.u32 %s158_s0, 4  ;;  %s140_s9 = smov [#allocation2]   ;;  %s14_s8 = int_to_ptr.hbm [resolvable:$true] %s13_s8 }
   0x2   :  { %s15_s10 = sshll.u32 %s140_s9, 4  ;;  %s16_s10 = int_to_ptr.vmem [resolvable:$true] %s15_s10 }
   0x3   :  { %18 = dma.hbm_to_vmem [thread:$0]  %s14_s8, 256, %s16_s10, [#allocation3]  }
   0x4   :  { %136 = dma.done.wait [#allocation3], 256  }
   0x5   :  { %137 = vsyncadd [#allocation3], 4294967040  ;;  %v23_v0 = vld [vmem:[#allocation2] sm:$0xff]  ;;  %v24_v1 = vld [vmem:[#allocation2 + $0x8] sm:$0xff]  ;;  %s141_s0 = smov [#allocation5]   ;;  %s66_s14 = sshll.u32 %s159_s1, 4  ;;  %s67_s14 = int_to_ptr.hbm [resolvable:$true] %s66_s14 }
   0x6   :  { %v27_v2 = vand.u32 2147483647, %v23_v0  ;;  %v28_v3 = vand.u32 2147483647, %v24_v1  ;;  %v25_v20 = vmax.f32 %v23_v0, 0.0  ;;  %v26_v24 = vmax.f32 %v24_v1, 0.0 }
   0x7   :  { %s64_s11 = sshll.u32 %s141_s0, 4  ;;  %s65_s11 = int_to_ptr.vmem [resolvable:$true] %s64_s11 }
   0x8   :  { %v29_v4 = vsub.f32 0.0, %v27_v2  ;;  %v30_v5 = vsub.f32 0.0, %v28_v3 }
   0xa   :  { %v31_v6 = vmul.f32 1.442695, %v29_v4  ;;  %v33_v7 = vmul.f32 1.442695, %v30_v5 }
   0xc   :  { %80 = vpow2.f32 %v31_v6 }
   0xd   :  { %82 = vpow2.f32 %v33_v7 }
  0x12   :  { %v81_v8 = vpop.eup %80 }
  0x13   :  { %v83_v9 = vpop.eup %82  ;;  %v35_v10 = vadd.f32 1.0, %v81_v8  ;;  %v38_v11 = vmul.f32 -0.5, %v81_v8  ;;  %v41_v15 = vand.u32 2147483647, %v81_v8 }
  0x14   :  { %v44_v12 = vadd.f32 1.0, %v83_v9  ;;  %v47_v13 = vmul.f32 -0.5, %v83_v9  ;;  %v50_v17 = vand.u32 2147483647, %v83_v9 }
  0x15   :  { %84 = vlog2.f32 %v35_v10  ;;  %v39_v14 = vadd.f32 1.0, %v38_v11  ;;  %vm42_vm0 = vcmp.lt.f32.partialorder %v41_v15, 0.0004427343 }
  0x16   :  { %86 = vlog2.f32 %v44_v12  ;;  %v48_v16 = vadd.f32 1.0, %v47_v13  ;;  %vm51_vm1 = vcmp.lt.f32.partialorder %v50_v17, 0.0004427343 }
  0x17   :  { %v40_v18 = vmul.f32 %v81_v8, %v39_v14 }
  0x18   :  { %v49_v21 = vmul.f32 %v83_v9, %v48_v16 }
  0x1b   :  { %v85_v19 = vpop.eup %84 }
  0x1c   :  { %v87_v22 = vpop.eup %86  ;;  %v37_v23 = vmul.f32 0.6931472, %v85_v19 }
  0x1d   :  { %v46_v25 = vmul.f32 0.6931472, %v87_v22 }
  0x1e   :  { %v43_v26 = vsel %vm42_vm0, %v40_v18, %v37_v23 }
  0x1f   :  { %v53_v27 = vadd.f32 %v43_v26, %v25_v20  ;;  %v52_v28 = vsel %vm51_vm1, %v49_v21, %v46_v25 }
  0x20   :  { %v54_v29 = vadd.f32 %v52_v28, %v26_v24 }
  0x21   :  { %v76_v30 = vadd.f32 -1.0, %v53_v27 }
  0x22   :  { %v77_v31 = vadd.f32 -1.0, %v54_v29 }
  0x23   :  { %57 = vst [vmem:[#allocation5] sm:$0xff] %v76_v30 }
  0x24   :  { %58 = vst [vmem:[#allocation5 + $0x8] sm:$0xff] %v77_v31 }
  0x25   :  { %69 = dma.vmem_to_hbm [thread:$0]  %s65_s11, 256, %s67_s14, [#allocation4]  }
  0x26   :  { %138 = dma.done.wait [#allocation4], 256  }
  0x27   :  { %139 = vsyncadd [#allocation4], 4294967040 }
  0x28   :  { %74 = vsyncpa [#allocation3], 1 }
  0x29   :  { %75 = vsyncpa [#allocation4], 1 }

</bundles_post_ra>
